<compile_context>
chip_gen: v7x
topology: tpu7x:2x2x1
jax: 0.10.0
libtpu: 0.0.40
codegen_flags: <defaults>
</compile_context>

<pallas_src>
import functools

import jax
import jax.numpy as jnp
from jax.experimental import pallas as pl
from jax.experimental.pallas import tpu as pltpu


def rgnn_layer_kernel(xbd_ref, w_ref, acat_ref, o_ref, *, n_nodes):
    """Fused forward: one block-diag linear matmul + one fused aggregation matmul."""
    # [(L+1)*N, (L+1)*(F_in+1)] @ [(L+1)*(F_in+1), F_out] -> [(L+1)*N, F_out]
    # Row block 0 = root output (bias folded in); row block l+1 = x @ W_l^T.
    s = jnp.dot(xbd_ref[...], w_ref[...], preferred_element_type=jnp.float32)

    root = s[:n_nodes, :]                                   # [N, F_out], f32
    msgs = s[n_nodes:, :].astype(jnp.bfloat16)              # [L*N, F_out]

    # All L scatter-add aggregations as one dense matmul:
    #   A_cat [N, L*N] @ msgs [L*N, F_out]  ==  sum_l A_l @ (x @ W_l^T)
    agg = jnp.dot(acat_ref[...], msgs, preferred_element_type=jnp.float32)

    o_ref[...] = (root + agg).astype(o_ref.dtype)


def rgnn_layer(x, w_root_t, b_root, w_convs_t, adj):
    """Pallas wrapper.

    x          : [N, F_in]          float32
    w_root_t   : [F_in, F_out]      (transposed from PyTorch's [out, in])
    b_root     : [F_out]
    w_convs_t  : [L, F_in, F_out]
    adj        : [L, N, N]          dense adjacency, adj[l, dst, src]
    returns    : [N, F_out]         float32
    """
    N, F_in = x.shape
    F_out = w_root_t.shape[1]
    L = w_convs_t.shape[0]
    K_aug = F_in + 1

    # ---- wrapper-side fusion / layout prep (one-time XLA glue) ----
    # Ones column so the root bias rides the fused matmul for free.
    x_aug = jnp.concatenate([x, jnp.ones((N, 1), x.dtype)], axis=1)      # [N, F_in+1]
    # Block-diagonal replication of x_aug: block r on the diagonal is x_aug.
    x_bd = jnp.kron(jnp.eye(L + 1, dtype=x.dtype), x_aug)                # [(L+1)*N, (L+1)*(F_in+1)]

    # Vertically stacked weights: [W_root^T; b_root] then [W_l^T; 0] per label.
    w_root_aug = jnp.concatenate([w_root_t, b_root.reshape(1, F_out)], axis=0)
    w_blocks = [w_root_aug] + [
        jnp.concatenate([w_convs_t[l], jnp.zeros((1, F_out), w_convs_t.dtype)], axis=0)
        for l in range(L)
    ]
    w_vstack = jnp.concatenate(w_blocks, axis=0)                         # [(L+1)*(F_in+1), F_out]

    # Horizontally concatenated adjacency: A_cat[dst, l*N + src] = adj[l, dst, src].
    a_cat = jnp.concatenate([adj[l] for l in range(L)], axis=1)          # [N, L*N]

    # bf16 operands (MXU native); f32 accumulation happens inside the kernel.
    x_bd = x_bd.astype(jnp.bfloat16)
    w_vstack = w_vstack.astype(jnp.bfloat16)
    a_cat = a_cat.astype(jnp.bfloat16)   # small integer multiplicities: exact in bf16

    R = (L + 1) * N          # rows of the stacked linear output
    C = (L + 1) * K_aug      # fused reduction dim

    kernel = functools.partial(rgnn_layer_kernel, n_nodes=N)

    return pl.pallas_call(
        kernel,
        out_shape=jax.ShapeDtypeStruct((N, F_out), jnp.float32),
        grid=(1,),
        in_specs=[
            pl.BlockSpec((R, C), lambda i: (0, 0)),
            pl.BlockSpec((C, F_out), lambda i: (0, 0)),
            pl.BlockSpec((N, L * N), lambda i: (0, 0)),
        ],
        out_specs=pl.BlockSpec((N, F_out), lambda i: (0, 0)),
        compiler_params=pltpu.CompilerParams(
            dimension_semantics=("arbitrary",)),
    )(x_bd, w_vstack, a_cat)


def edge_index_to_dense_adj(edge_index, num_nodes):
    """edge_index: [2, E] (row 0 = src, row 1 = dst) -> dense [N, N] adjacency
    with adj[dst, src] = number of (src, dst) edges (matches scatter-add)."""
    src, dst = edge_index[0], edge_index[1]
    adj = jnp.zeros((num_nodes, num_nodes), dtype=jnp.float32)
    adj = adj.at[dst, src].add(1.0)
    return adj


def reference_forward(x, w_root_t, b_root, w_convs_t, adj):
    """Pure-JAX float32 reference of RGNNLayer.forward (aggr='add')."""
    out = x @ w_root_t + b_root.reshape(1, -1)
    for l in range(w_convs_t.shape[0]):
        out = out + adj[l] @ (x @ w_convs_t[l])
    return out


if __name__ == "__main__":
    # Small, module-consistent shapes.
    N = 16            # number of graph nodes
    F_in = 16         # in_features
    F_out = 32        # out_features
    L = 3             # n_edge_labels
    E = 24            # edges per label
    # aggr = 'add' (sum aggregation)

    key = jax.random.PRNGKey(0)
    k_x, k_wr, k_br, k_wc, k_e = jax.random.split(key, 5)

    x = jax.random.normal(k_x, (N, F_in), dtype=jnp.float32)

    # Parameters (PyTorch Linear stores [out, in]; keep transposed [in, out]).
    w_root = jax.random.normal(k_wr, (F_out, F_in), dtype=jnp.float32) * 0.1
    b_root = jax.random.normal(k_br, (F_out,), dtype=jnp.float32) * 0.1
    w_convs = jax.random.normal(k_wc, (L, F_out, F_in), dtype=jnp.float32) * 0.1

    w_root_t = jnp.transpose(w_root)                    # [F_in, F_out]
    w_convs_t = jnp.transpose(w_convs, (0, 2, 1))       # [L, F_in, F_out]

    # One edge_index per edge label, converted to dense adjacency (glue).
    list_of_edge_index = []
    ek = k_e
    for _ in range(L):
        ek, sub = jax.random.split(ek)
        list_of_edge_index.append(
            jax.random.randint(sub, (2, E), minval=0, maxval=N, dtype=jnp.int32))
    adj = jnp.stack(
        [edge_index_to_dense_adj(ei, N) for ei in list_of_edge_index], axis=0)  # [L, N, N]

    out = rgnn_layer(x, w_root_t, b_root, w_convs_t, adj)
    out = jax.block_until_ready(out)

    ref = reference_forward(x, w_root_t, b_root, w_convs_t, adj)
    assert out.shape == (N, F_out)
    # Tolerance relaxed for bf16 operand quantization (f32 accumulation kept).
    assert jnp.allclose(out, ref, atol=5e-2, rtol=5e-2), "mismatch vs reference"

    print("KERNEL_OK")
</pallas_src>

<mosaic_0001>
module attributes {stable_mosaic.version = 11 : i64} {
  func.func @rgnn_layer_kernel(%arg0: i32, %arg1: memref<64x68xbf16, #tpu.memory_space<vmem>>, %arg2: memref<68x32xbf16, #tpu.memory_space<vmem>>, %arg3: memref<16x48xbf16, #tpu.memory_space<vmem>>, %arg4: memref<16x32xf32, #tpu.memory_space<vmem>>) attributes {dimension_semantics = [#tpu.dimension_semantics<arbitrary>], iteration_bounds = array<i64: 1>, scalar_prefetch = 0 : i64, scratch_operands = 0 : i64, tpu.core_type = #tpu.core_type<tc>, window_params = [{pipeline_mode = #tpu.pipeline_mode<synchronous>, transform_indices = @transform_0, window_bounds = array<i64: 64, 68>}, {pipeline_mode = #tpu.pipeline_mode<synchronous>, transform_indices = @transform_1, window_bounds = array<i64: 68, 32>}, {pipeline_mode = #tpu.pipeline_mode<synchronous>, transform_indices = @transform_2, window_bounds = array<i64: 16, 48>}, {pipeline_mode = #tpu.pipeline_mode<synchronous>, transform_indices = @transform_3, window_bounds = array<i64: 16, 32>}]} {
    %c0 = arith.constant 0 : index
    %c0_0 = arith.constant 0 : index
    %0 = vector.load %arg1[%c0, %c0_0] : memref<64x68xbf16, #tpu.memory_space<vmem>>, vector<64x68xbf16>
    %c0_1 = arith.constant 0 : index
    %c0_2 = arith.constant 0 : index
    %1 = vector.load %arg2[%c0_1, %c0_2] : memref<68x32xbf16, #tpu.memory_space<vmem>>, vector<68x32xbf16>
    %cst = arith.constant dense<0.000000e+00> : vector<64x32xf32>
    %2 = tpu.matmul %0, %1, %cst {dimension_numbers = #tpu.dot_dimension_numbers<[1], [0], [0], [1], [0, 0, 1, 1], [], []>} : vector<64x68xbf16>, vector<68x32xbf16>, vector<64x32xf32> -> vector<64x32xf32>
    %3 = vector.extract_strided_slice %2 {offsets = [0, 0], sizes = [16, 32], strides = [1, 1]} : vector<64x32xf32> to vector<16x32xf32>
    %4 = vector.extract_strided_slice %2 {offsets = [16, 0], sizes = [48, 32], strides = [1, 1]} : vector<64x32xf32> to vector<48x32xf32>
    %5 = arith.truncf %4 : vector<48x32xf32> to vector<48x32xbf16>
    %c0_3 = arith.constant 0 : index
    %c0_4 = arith.constant 0 : index
    %6 = vector.load %arg3[%c0_3, %c0_4] : memref<16x48xbf16, #tpu.memory_space<vmem>>, vector<16x48xbf16>
    %cst_5 = arith.constant dense<0.000000e+00> : vector<16x32xf32>
    %7 = tpu.matmul %6, %5, %cst_5 {dimension_numbers = #tpu.dot_dimension_numbers<[1], [0], [0], [1], [0, 0, 1, 1], [], []>} : vector<16x48xbf16>, vector<48x32xbf16>, vector<16x32xf32> -> vector<16x32xf32>
    %8 = arith.addf %3, %7 : vector<16x32xf32>
    %c0_6 = arith.constant 0 : index
    %c0_7 = arith.constant 0 : index
    %9 = vector.load %arg4[%c0_6, %c0_7] : memref<16x32xf32, #tpu.memory_space<vmem>>, vector<16x32xf32>
    tpu.vector_store %arg4[%c0_6, %c0_7], %8 {strides = array<i32>} : memref<16x32xf32, #tpu.memory_space<vmem>>, vector<16x32xf32>,
    return
  }
  func.func @transform_0(%arg0: i32) -> (i32, i32) {
    %c0_i32 = arith.constant 0 : i32
    %c0_i32_0 = arith.constant 0 : i32
    %c0_i32_1 = arith.constant 0 : i32
    return %c0_i32, %c0_i32_0 : i32, i32
  }
  func.func @transform_1(%arg0: i32) -> (i32, i32) {
    %c0_i32 = arith.constant 0 : i32
    %c0_i32_0 = arith.constant 0 : i32
    %c0_i32_1 = arith.constant 0 : i32
    return %c0_i32, %c0_i32_0 : i32, i32
  }
  func.func @transform_2(%arg0: i32) -> (i32, i32) {
    %c0_i32 = arith.constant 0 : i32
    %c0_i32_0 = arith.constant 0 : i32
    %c0_i32_1 = arith.constant 0 : i32
    return %c0_i32, %c0_i32_0 : i32, i32
  }
  func.func @transform_3(%arg0: i32) -> (i32, i32) {
    %c0_i32 = arith.constant 0 : i32
    %c0_i32_0 = arith.constant 0 : i32
    %c0_i32_1 = arith.constant 0 : i32
    return %c0_i32, %c0_i32_0 : i32, i32
  }
}

</mosaic_0001>

<bundles_post_ra>
// kernel: tpu_custom_call.1
= control target key start
LH: loop header
LB: loop body
LE: loop exit
PB: predicated region body
PF: predicated region fallthrough
CT: control target
= control target key end

     0   :  { %vm80_vm0 = vcmask 556032   ;;  %s405_s0 = inlined_call_operand.vmem [shape: bf16[64,68], index: 0, kind: input, shape index: {}]   ;;  %s406_s1 = inlined_call_operand.vmem [shape: bf16[68,32], index: 1, kind: input, shape index: {}]   ;;  %s407_s2 = inlined_call_operand.vmem [shape: bf16[16,48], index: 2, kind: input, shape index: {}]   ;;  %s408_s3 = inlined_call_operand.hbm [shape: f32[16,32], index: 3, kind: output, shape index: {}]  }
   0x1   :  { %v300_v0 = vld [vmem:[%s406_s1] sm:$0xff]   ;;  %v301_v1 = vld [vmem:[%s406_s1 + $0x8] sm:$0xff]   ;;  %v302_v2 = vld [vmem:[%s406_s1 + $0x10] sm:$0xff]  }
   0x2   :  { %266 = vmatprep.subr.bf16.mxu0 %v300_v0  ;;  %v305_v3 = vld [vmem:[%s405_s0] sm:$0xff]   ;;  %v303_v4 = vld [vmem:[%s406_s1 + $0x18] sm:$0xff]  }
   0x3   :  { %267 = vmatpush3.bf16.msra.mxu0 %v300_v0  ;;  %276 = vmatprep.mubr.msk.bf16.mxu0 %vm80_vm0, %v305_v3 }
   0x4   :  { %268 = vmatprep.subr.bf16.mxu0 %v301_v1 }
   0x7   :  { %269 = vmatpush3.bf16.msra.mxu0 %v301_v1 }
   0x8   :  { %270 = vmatprep.subr.bf16.mxu0 %v302_v2 }
   0x9   :  { %8 = vsyncpa [#allocation3], 0  ;;  %v304_v5 = vld [vmem:[%s406_s1 + $0x20] ss:$0 sps:$4 sm:$0x33]   ;;  %vm93_vm1 = vcmask 1041408  }
   0xa   :  { %v95_v6 = vsel %vm93_vm1, %v304_v5, 0  ;;  %v306_v7 = vld [vmem:[%s405_s0 + $0x8] sm:$0xff]   ;;  %v307_v8 = vld [vmem:[%s405_s0 + $0x10] sm:$0xff]   ;;  %v308_v9 = vld [vmem:[%s405_s0 + $0x18] sm:$0xff]   ;;  %v334_v10 = vmov 0.0   ;;  %vm335_vm2 = vmmov 0  }
   0xb   :  { %271 = vmatpush3.bf16.msra.mxu0 %v302_v2  ;;  %284 = vmatprep.subr.bf16.mxu1 %v334_v10  ;;  %v309_v22 = vld [vmem:[%s407_s2] sm:$0xff]   ;;  %vm172_vm3 = vcmask 392192   ;;  %s336_s30 = smov [#allocation2]   ;;  %vm219_vm4 = vcmask 261120  }
   0xc   :  { %272 = vmatprep.subr.bf16.mxu0 %v303_v4  ;;  %290 = vmatprep.mubr.msk.bf16.mxu1 %vm335_vm2, %v334_v10  ;;  %s227_s4 = sshll.u32 %s336_s30, 4  ;;  %s228_s4 = int_to_ptr.vmem [resolvable:$true] %s227_s4 }
   0xd   :  { %s310_s5 = scalar_lea.vmem %s228_s4, 256  ;;  %p315_p1 = scmp.lt.s32.totalorder %s228_s4, %s228_s4 }
   0xe   :  { %p311_p0 = scmp.ne.s32.totalorder %s228_s4, %s310_s5  ;;  %p316_p2 = scmp.lt.s32.totalorder %s310_s5, %s310_s5 }
   0xf   :  { %273 = vmatpush3.bf16.msra.mxu0 %v303_v4 }
  0x10   :  { %294 = vmatprep.subr.msk.bf16.mxu0 %vm93_vm1, %v304_v5  ;;  %p317_p3 = por %p316_p2, %p315_p1 }
  0x12   :  { %p318_p4 = pnand %p317_p3, %p311_p0 }
  0x13   :  { %275 = vmatpush3.bf16.msra.mxu0 %v95_v6 }
  0x16   :  { %277 = vmatmul.mubr.msk.bf16.vlgmr.msra.gmra.mrb[0].mxu0 %vm80_vm0, %v306_v7 }
  0x17   :  { %280 = vmatprep.mubr.msk.bf16.mxu0 %vm80_vm0, %v307_v8 }
  0x1e   :  { %281 = vmatmul.mubr.msk.bf16.gmra.mrb[4].mxu0 %vm80_vm0, %v308_v9 }
  0xe9   :  { %v278_v11 = vpop.f32.mrb[0].mxu0 }
  0xea   :  { %v131_v12 = vpop.f32.mrb[1].mxu0 }
  0xeb   :  { %v279_v13 = vpop.f32.mrb[2].mxu0 }
  0xec   :  { %v162_v14 = vpack.c.bf16 %v279_v13, %v278_v11  ;;  %v134_v15 = vpop.f32.mrb[3].mxu0 }
  0xee   :  { %285 = vmatpush3.bf16.msra.mxu1 %v162_v14 }
  0xef   :  { %286 = vmatprep.subr.bf16.mxu1 %v334_v10 }
  0xf1   :  { %v282_v16 = vpop.f32.mrb[4].mxu0 }
  0xf2   :  { %v147_v17 = vpop.f32.mrb[5].mxu0 }
  0xf3   :  { %v283_v18 = vpop.f32.mrb[6].mxu0 }
  0xf4   :  { %v164_v19 = vpack.c.bf16 %v283_v18, %v282_v16  ;;  %v150_v20 = vpop.f32.mrb[7].mxu0 }
  0xf5   :  { %v163_v21 = vpack.c.bf16 %v150_v20, %v147_v17 }
  0xf7   :  { %287 = vmatpush3.bf16.msra.mxu1 %v163_v21 }
  0xf8   :  { %288 = vmatprep.subr.bf16.mxu1 %v334_v10 }
  0xfb   :  { %289 = vmatpush3.bf16.msra.mxu1 %v164_v19 }
  0xfe   :  { %291 = vmatmul.mubr.msk.bf16.vlgmr.msra.gmra.mrb[0].mxu1 %vm172_vm3, %v309_v22 }
 0x1d1   :  { %v210_v23 = vpop.f32.mrb[0].mxu1 }
 0x1d2   :  { %v217_v24 = vadd.f32 %v210_v23, %v131_v12  ;;  %v292_v25 = vpop.f32.mrb[1].mxu1 }
 0x1d3   :  { %v213_v26 = vpop.f32.mrb[2].mxu1 }
 0x1d4   :  { %220 = vst.msk [vmem:[#allocation2] sm:$0xff] %vm219_vm4, %v217_v24  ;;  %v218_v27 = vadd.f32 %v213_v26, %v134_v15  ;;  %v293_v28 = vpop.f32.mrb[3].mxu1 }
 0x1d6   :  { %221 = vst.msk [vmem:[#allocation2 + $0x8] sm:$0xff] %vm219_vm4, %v218_v27 }
 0x1d7   :  { %321 = shalt.err (!%p318_p4)
}
 0x1d8   :  { %s322_s7 = scalar_lea.hbm %s408_s3, 256 }
 0x1d9   :  { %p323_p5 = scmp.ne.s32.totalorder %s408_s3, %s322_s7  ;;  %p326_p6 = scmp.lt.u32.totalorder %s322_s7, %s408_s3 }
 0x1db   :  { %p328_p7 = pnand %p326_p6, %p323_p5 }
 0x1dd   :  { %331 = shalt.err (!%p328_p7)
}
 0x1de   :  { %s337_s12 = smov 128   ;;  %s338_s13 = smov 8  }
 0x1df   :  { %233 = dma.vmem_to_hbm [thread:$0]  %s228_s4, 256, %s408_s3, [#allocation3], %s337_s12, %s337_s12, %s338_s13  }
 0x1e0   :  { %332 = dma.done.wait [#allocation3], 256  }
 0x1e1   :  { %333 = vsyncadd [#allocation3], 4294967040 }
 0x1e2   :  { %237 = vsyncpa [#allocation3], 1 }

</bundles_post_ra>
